<compile_context>
chip_gen: v7x
topology: tpu7x:2x2x1
jax: 0.10.0
libtpu: 0.0.40
codegen_flags: <defaults>
</compile_context>

<pallas_src>
import functools

import jax
import jax.numpy as jnp
from jax.experimental import pallas as pl
from jax.experimental.pallas import tpu as pltpu


def _hint_loss_kernel(B, bc, tix_ref, six_ref, ft_ref, fs_ref, out_ref):
    """One gathered row per grid step; vectorized accumulation into out_ref.

    tix_ref/six_ref: SMEM int32[nc*bc] flat row indices (scalar-prefetched;
                     consumed by the index_maps, present per convention).
    ft_ref/fs_ref:   VMEM (1, 1, D) gathered teacher / student rows.
    out_ref:         VMEM (1, 1, D) f32 partial-sum accumulator, resident
                     across the reduction axis (one row per "parallel" index).
    """
    c = pl.program_id(0)        # partial-sum / core index (parallel axis)
    b = pl.program_id(1)        # sample-within-partial index (reduction axis)

    @pl.when(b == 0)
    def _init():
        out_ref[...] = jnp.zeros_like(out_ref)

    sample = c * bc + b

    @pl.when(sample < B)        # skip padded tail samples
    def _accumulate():
        d = ft_ref[...].astype(jnp.float32) - fs_ref[...].astype(jnp.float32)
        out_ref[...] += d * d


def hint_loss_2(feature_t, answer_label, feature_s, rationale_label,
                *, num_partials=2):
    """Pallas implementation of HintLoss_2.forward. Returns a scalar float32."""
    B, A_t, D = feature_t.shape
    B_s, A_s, D_s = feature_s.shape
    assert B == B_s and D == D_s
    assert B == answer_label.shape[0] and B == rationale_label.shape[0]

    # Flat-row views: [B, A, D] -> [B*A, 1, D] (contiguous, free reshape).
    ft = feature_t.reshape(B * A_t, 1, D)
    fs = feature_s.reshape(B * A_s, 1, D)

    # Clamp labels (never a silent OOB DMA) and build flat row indices.
    ans = jnp.clip(answer_label.astype(jnp.int32), 0, A_t - 1)
    rat = jnp.clip(rationale_label.astype(jnp.int32), 0, A_s - 1)
    rows = jnp.arange(B, dtype=jnp.int32)
    t_idx = rows * A_t + ans
    s_idx = rows * A_s + rat

    # Split the batch into `nc` independent partial sums (v7x: 2 TensorCores).
    nc = max(1, min(int(num_partials), B))
    bc = pl.cdiv(B, nc)                        # samples per partial
    pad = nc * bc - B
    if pad:
        t_idx = jnp.pad(t_idx, (0, pad))       # padded entries point at row 0:
        s_idx = jnp.pad(s_idx, (0, pad))       # valid DMA, contribution skipped

    kernel = functools.partial(_hint_loss_kernel, B, bc)

    partials = pl.pallas_call(
        kernel,
        out_shape=jax.ShapeDtypeStruct((nc, 1, D), jnp.float32),
        grid_spec=pltpu.PrefetchScalarGridSpec(
            num_scalar_prefetch=2,             # t_idx, s_idx -> SMEM
            grid=(nc, bc),
            in_specs=[
                # DMA-level gather: only the labelled class row is moved.
                pl.BlockSpec(
                    (1, 1, D),
                    lambda c, b, tix, six, bc=bc: (tix[c * bc + b], 0, 0)),
                pl.BlockSpec(
                    (1, 1, D),
                    lambda c, b, tix, six, bc=bc: (six[c * bc + b], 0, 0)),
            ],
            # Same output block across the reduction axis -> resident accumulator.
            out_specs=pl.BlockSpec((1, 1, D),
                                   lambda c, b, tix, six: (c, 0, 0)),
        ),
        compiler_params=pltpu.CompilerParams(
            dimension_semantics=("parallel", "arbitrary")),
    )(t_idx, s_idx, ft, fs)

    # Tiny (nc, 1, D) finalize: one cross-lane reduce + mean normalization.
    return jnp.sum(partials) / jnp.float32(B * D)


if __name__ == "__main__":
    # Small deterministic example: B=2 samples, 4 answer / 4 rationale choices,
    # hidden D=32.
    B, A_T, A_S, D = 2, 4, 4, 32
    key = jax.random.PRNGKey(0)
    k1, k2, k3, k4 = jax.random.split(key, 4)

    feature_t = jax.random.normal(k1, (B, A_T, D), dtype=jnp.float32)
    feature_s = jax.random.normal(k2, (B, A_S, D), dtype=jnp.float32)
    answer_label = jax.random.randint(k3, (B,), 0, A_T, dtype=jnp.int32)
    rationale_label = jax.random.randint(k4, (B,), 0, A_S, dtype=jnp.int32)

    loss = hint_loss_2(feature_t, answer_label, feature_s, rationale_label)
    loss = jax.block_until_ready(loss)

    # Pure-JAX reference for sanity.
    ref_t = feature_t[jnp.arange(B), answer_label]
    ref_s = feature_s[jnp.arange(B), rationale_label]
    ref = jnp.mean((ref_t - ref_s) ** 2)
    assert jnp.allclose(loss, ref, rtol=1e-5, atol=1e-6), (loss, ref)

    print("KERNEL_OK")
</pallas_src>

<mosaic_0001>
module attributes {stable_mosaic.version = 11 : i64} {
  func.func @_hint_loss_kernel(%arg0: i32, %arg1: i32, %arg2: memref<2xi32, #tpu.memory_space<smem>>, %arg3: memref<2xi32, #tpu.memory_space<smem>>, %arg4: memref<1x1x32xf32, #tpu.memory_space<vmem>>, %arg5: memref<1x1x32xf32, #tpu.memory_space<vmem>>, %arg6: memref<1x1x32xf32, #tpu.memory_space<vmem>>) attributes {dimension_semantics = [#tpu.dimension_semantics<parallel>, #tpu.dimension_semantics<arbitrary>], iteration_bounds = array<i64: 2, 1>, scalar_prefetch = 2 : i64, scratch_operands = 0 : i64, tpu.core_type = #tpu.core_type<tc>, window_params = [{transform_indices = @transform_0, window_bounds = array<i64: 1, 1, 32>}, {transform_indices = @transform_1, window_bounds = array<i64: 1, 1, 32>}, {transform_indices = @transform_2, window_bounds = array<i64: 1, 1, 32>}]} {
    %c0_i32 = arith.constant 0 : i32
    %0 = arith.cmpi eq, %arg1, %c0_i32 : i32
    %1 = arith.extui %0 : i1 to i32
    %c0_i32_0 = arith.constant 0 : i32
    %2 = arith.cmpi ne, %1, %c0_i32_0 : i32
    scf.if %2 {
      %cst = arith.constant 0.000000e+00 : f32
      %8 = vector.broadcast %cst : f32 to vector<1x1x32xf32>
      %c0 = arith.constant 0 : index
      %c0_2 = arith.constant 0 : index
      %c0_3 = arith.constant 0 : index
      %9 = vector.load %arg6[%c0, %c0_2, %c0_3] : memref<1x1x32xf32, #tpu.memory_space<vmem>>, vector<1x1x32xf32>
      tpu.vector_store %arg6[%c0, %c0_2, %c0_3], %8 {strides = array<i32>} : memref<1x1x32xf32, #tpu.memory_space<vmem>>, vector<1x1x32xf32>,
    } else {
    }
    %c1_i32 = arith.constant 1 : i32
    %3 = arith.muli %arg0, %c1_i32 : i32
    %4 = arith.addi %3, %arg1 : i32
    %c2_i32 = arith.constant 2 : i32
    %5 = arith.cmpi slt, %4, %c2_i32 : i32
    %6 = arith.extui %5 : i1 to i32
    %c0_i32_1 = arith.constant 0 : i32
    %7 = arith.cmpi ne, %6, %c0_i32_1 : i32
    scf.if %7 {
      %c0 = arith.constant 0 : index
      %c0_2 = arith.constant 0 : index
      %c0_3 = arith.constant 0 : index
      %8 = vector.load %arg4[%c0, %c0_2, %c0_3] : memref<1x1x32xf32, #tpu.memory_space<vmem>>, vector<1x1x32xf32>
      %c0_4 = arith.constant 0 : index
      %c0_5 = arith.constant 0 : index
      %c0_6 = arith.constant 0 : index
      %9 = vector.load %arg5[%c0_4, %c0_5, %c0_6] : memref<1x1x32xf32, #tpu.memory_space<vmem>>, vector<1x1x32xf32>
      %10 = arith.subf %8, %9 : vector<1x1x32xf32>
      %c0_7 = arith.constant 0 : index
      %c0_8 = arith.constant 0 : index
      %c0_9 = arith.constant 0 : index
      %11 = vector.load %arg6[%c0_7, %c0_8, %c0_9] : memref<1x1x32xf32, #tpu.memory_space<vmem>>, vector<1x1x32xf32>
      %12 = arith.mulf %10, %10 : vector<1x1x32xf32>
      %13 = arith.addf %11, %12 : vector<1x1x32xf32>
      %c0_10 = arith.constant 0 : index
      %c0_11 = arith.constant 0 : index
      %c0_12 = arith.constant 0 : index
      %14 = vector.load %arg6[%c0_10, %c0_11, %c0_12] : memref<1x1x32xf32, #tpu.memory_space<vmem>>, vector<1x1x32xf32>
      tpu.vector_store %arg6[%c0_10, %c0_11, %c0_12], %13 {strides = array<i32>} : memref<1x1x32xf32, #tpu.memory_space<vmem>>, vector<1x1x32xf32>,
    } else {
    }
    return
  }
  func.func @transform_0(%arg0: i32, %arg1: i32, %arg2: memref<2xi32, #tpu.memory_space<smem>>, %arg3: memref<2xi32, #tpu.memory_space<smem>>) -> (i32, i32, i32) {
    %c1_i32 = arith.constant 1 : i32
    %0 = arith.muli %arg0, %c1_i32 : i32
    %1 = arith.addi %0, %arg1 : i32
    %2 = arith.index_cast %1 : i32 to index
    %3 = memref.load %arg2[%2] : memref<2xi32, #tpu.memory_space<smem>>
    %c0_i32 = arith.constant 0 : i32
    %c0_i32_0 = arith.constant 0 : i32
    %c0_i32_1 = arith.constant 0 : i32
    return %3, %c0_i32, %c0_i32_0 : i32, i32, i32
  }
  func.func @transform_1(%arg0: i32, %arg1: i32, %arg2: memref<2xi32, #tpu.memory_space<smem>>, %arg3: memref<2xi32, #tpu.memory_space<smem>>) -> (i32, i32, i32) {
    %c1_i32 = arith.constant 1 : i32
    %0 = arith.muli %arg0, %c1_i32 : i32
    %1 = arith.addi %0, %arg1 : i32
    %2 = arith.index_cast %1 : i32 to index
    %3 = memref.load %arg3[%2] : memref<2xi32, #tpu.memory_space<smem>>
    %c0_i32 = arith.constant 0 : i32
    %c0_i32_0 = arith.constant 0 : i32
    %c0_i32_1 = arith.constant 0 : i32
    return %3, %c0_i32, %c0_i32_0 : i32, i32, i32
  }
  func.func @transform_2(%arg0: i32, %arg1: i32, %arg2: memref<2xi32, #tpu.memory_space<smem>>, %arg3: memref<2xi32, #tpu.memory_space<smem>>) -> (i32, i32, i32) {
    %c0_i32 = arith.constant 0 : i32
    %c0_i32_0 = arith.constant 0 : i32
    %c0_i32_1 = arith.constant 0 : i32
    return %arg0, %c0_i32, %c0_i32_0 : i32, i32, i32
  }
}

</mosaic_0001>

<bundles_post_ra>
// kernel: tpu_custom_call.1
= control target key start
LH: loop header
LB: loop body
LE: loop exit
PB: predicated region body
PF: predicated region fallthrough
CT: control target
= control target key end

     0   :  { %s841_s0 = inlined_call_operand.hbm [shape: s32[2], index: 0, kind: input, shape index: {}]   ;;  %s842_s2 = inlined_call_operand.hbm [shape: f32[8,1,32], index: 2, kind: input, shape index: {}]   ;;  %s843_s3 = inlined_call_operand.vmem [shape: f32[8,1,32], index: 3, kind: input, shape index: {}]   ;;  %s844_s4 = inlined_call_operand.hbm [shape: f32[2,1,32], index: 4, kind: output, shape index: {}]   ;;  %s845_s1 = inlined_call_operand.vmem [shape: s32[2], index: 1, kind: input, shape index: {}]  }
   0x1   :  { %s428_s17 = scalar_lea.hbm %s841_s0, 16 }
   0x2   :  { %p429_p0 = scmp.ne.s32.totalorder %s841_s0, %s428_s17  ;;  %p432_p1 = scmp.lt.u32.totalorder %s428_s17, %s841_s0 }
   0x4   :  { %p434_p2 = pnand %p432_p1, %p429_p0 }
   0x6   :  { %437 = shalt.err (!%p434_p2)  }
   0x7   :  { %s590_s22 = smov [#allocation3]   ;;  %s11_s27 = sshll.u32 %s845_s1, 4  ;;  %s12_s27 = int_to_ptr.vmem [resolvable:$true] %s11_s27 }
   0x8   :  { %10 = dma.hbm_to_smem %s841_s0, 16, %s590_s22, [#allocation2] }
   0x9   :  { %s438_s28 = scalar_lea.vmem %s12_s27, 16  ;;  %p443_p4 = scmp.lt.s32.totalorder %s12_s27, %s12_s27 }
   0xa   :  { %p439_p3 = scmp.ne.s32.totalorder %s12_s27, %s438_s28  ;;  %p444_p5 = scmp.lt.s32.totalorder %s438_s28, %s438_s28 }
   0xc   :  { %p445_p6 = por %p444_p5, %p443_p4 }
   0xe   :  { %p446_p7 = pnand %p445_p6, %p439_p3 }
  0x10   :  { %449 = shalt.err (!%p446_p7)  }
  0x11   :  { %s591_s29 = smov [#allocation4]  }
  0x12   :  { %14 = dma.vmem_to_smem %s12_s27, 16, %s591_s29, [#allocation2] }
  0x13   :  { %544 = dma.done.wait [#allocation2], 32 }
  0x14   :  { %545 = vsyncadd [#allocation2], 4294967264 }
  0x15   :  { %16 = sfence }
  0x16   :  { %17 = vsyncpa [#allocation6], 0 }
  0x17   :  { %19 = vsyncpa [#allocation6 + $0x1], 0 }
  0x18   :  { %20 = vsyncpa [#allocation7], 0 }
  0x19   :  { %22 = vsyncpa [#allocation7 + $0x1], 0  ;;  %s635_s0 = smov 0   ;;  %s637_s1 = smov 0  }
  0x1a   :  { %s639_s30 = smov 0   ;;  %s641_s5 = smov 0  }
  0x1b   :  { %s643_s6 = smov 0   ;;  %s645_s7 = smov 0  }
  0x1c   :  { %s647_s8 = smov 0   ;;  %s649_s9 = smov 0  }
  0x1d   :  { %s651_s10 = smov 0  }
  0x1e LB: > { %s325_s11 = sadd.s32 4294967295, %s588_s10   ;;  %s326_s12 = sadd.s32 4294967294, %s588_s10   ;;  %s588_s10 = sphi %s651_s10, %s28_s10   ;;  %s584_s9 = sphi %s649_s9, %s865_s9   ;;  %s580_s8 = sphi %s647_s8, %s864_s8   ;;  %s576_s7 = sphi %s645_s7, %s863_s7   ;;  %s572_s6 = sphi %s643_s6, %s862_s6   ;;  %s568_s5 = sphi %s641_s5, %s861_s5   ;;  %s564_s30 = sphi %s639_s30, %s860_s30   ;;  %s560_s1 = sphi %s637_s1, %s859_s1   ;;  %s556_s0 = sphi %s635_s0, %s858_s0  }
  0x1f   : > { %s40_s13 = sadd.s32 1, %s584_s9  ;;  %s45_s14 = sld [smem:[#allocation3 + %s584_s9]] }
  0x20   : > { %p42_p8 = scmp.ge.s32.totalorder %s40_s13, 2  ;;  %s51_s15 = sadd.s32 1, %s576_s7 }
  0x21   : > { %p58_p9 = scmp.ne.s32.totalorder %s576_s7, %s572_s6  ;;  %p59_p10 = scmp.eq.s32.totalorder %s588_s10, 0 }
  0x22   : > { %s867_s13 = smov (%p42_p8, %s40_s13), 0  ;;  %p64_p12 = scmp.ne.s32.totalorder %s572_s6, %s568_s5 }
  0x23   : > { %p688_p11 = por %p59_p10, %p58_p9  ;;  %s47_s17 = sld [smem:[#allocation3 + %s867_s13]] }
  0x24   : > { %p65_p13 = scmp.eq.s32.totalorder %s325_s11, 0  ;;  %s104_s18 = ssub.s32 %s584_s9, %s867_s13 }
  0x25   : > { %s107_s19 = sadd.s32 1, %s564_s30  ;;  %p105_p1 = scmp.eq.s32.totalorder %s104_s18, 0 }
  0x26   : > { %p697_p0 = por %p65_p13, %p64_p12  ;;  %p117_p2 = scmp.ne.s32.totalorder %s564_s30, %s560_s1 }
  0x27   : > { %p118_p3 = scmp.eq.s32.totalorder %s325_s11, 1  ;;  %p123_p5 = scmp.ne.s32.totalorder %s560_s1, %s556_s0 }
  0x28   : > { %s849_s20 = scalar_select %p697_p0, 1, 0 }
  0x29   : > { %s704_s21 = scalar_select %p105_p1, %s564_s30, %s107_s19  }
  0x2a   : > { %p706_p4 = por %p118_p3, %p117_p2  ;;  %s48_s23 = ssub.s32 %s45_s14, %s47_s17 }
  0x2b   : > { %p124_p6 = scmp.eq.s32.totalorder %s326_s12, 1  ;;  %p49_p7 = scmp.eq.s32.totalorder %s48_s23, 0 }
  0x2c   : > { %s850_s22 = scalar_select %p706_p4, 1, 0 }
  0x2d   : > { %p713_p9 = por %p124_p6, %p123_p5  ;;  %p351_p10 = scmp.lt.s32.totalorder %s588_s10, 2 }
  0x2e   : > { %s719_s25 = scalar_select %p49_p7, %s576_s7, %s51_s15  }
  0x2f   : > { %s851_s24 = scalar_select %p713_p9, 1, 0 }
  0x30   : > { %s144_s26 = sand.u32 1, %s576_s7   ;;  %p724_p12 = pnand %p351_p10, %p688_p11 }
  0x31   : > { %s335_s28 = scalar_select %p688_p11, [#allocation3], [#allocation9] }
  0x32   : > { %s336_s29 = scalar_select %p688_p11, %s584_s9, 0 }
  0x33   : > { %s869_s28 = smov (!%p351_p10, %s335_s28), [#allocation10]  ;;  %p330_p13 = scmp.ge.s32.totalorder %s588_s10, 1 }
  0x34   : > { %s871_s29 = smov (!%p351_p10, %s336_s29), 0  ;;  %p171_p1 = scmp.lt.s32.totalorder %s588_s10, 3 }
  0x35   : > { %s149_s5 = sld [smem:[%s869_s28 + %s871_s29]]  ;;  %s147_s11 = scalar_lea.vmem [#allocation5], %s144_s26 }
  0x36   : > { %s156_s12 = sshll.u32 %s147_s11, 4  ;;  %p735_p2 = pnand %p330_p13, %p171_p1  ;;  %s739_s12 = int_to_ptr.vmem [resolvable:$true] %s156_s12 }
  0x37   : > { %s145_s19 = scalar_lea.sflag [#allocation6], %s144_s26  ;;  %p452_p3 = pneg %p724_p12 }
  0x3b   : > { %s329_s15 = sshll.u32 %s149_s5, 4  ;;  %s455_s5 = scalar_lea.hbm %s842_s2, 128 }
  0x3c   : > { %s744_s16 = scalar_lea.hbm %s842_s2, %s329_s15 }
  0x3d   : > { %s450_s23 = scalar_lea.hbm %s744_s16, 16  ;;  %p456_p7 = scmp.lt.u32.totalorder %s744_s16, %s842_s2 }
  0x3e   : > { %p451_p11 = scmp.ne.s32.totalorder %s744_s16, %s450_s23  ;;  %p457_p10 = scmp.lt.u32.totalorder %s455_s5, %s450_s23 }
  0x3f   : > { %p459_p1 = scmp.lt.u32.totalorder %s450_s23, %s744_s16 }
  0x40   : > { %p453_p5 = pnand %p452_p3, %p451_p11  ;;  %p458_p13 = por %p457_p10, %p456_p7 }
  0x42   : > { %p454_p6 = pneg %p453_p5  ;;  %p460_p8 = por %p459_p1, %p458_p13 }
  0x44   : > { %p461_p9 = pnand %p460_p8, %p454_p6 }
  0x46   : > { %464 = shalt.err (!%p461_p9)
}
  0x47   : > { %s465_s26 = scalar_lea.vmem %s739_s12, 16  ;;  %s592_s17 = smov [#allocation5]  }
  0x48   : > { %p466_p11 = scmp.ne.s32.totalorder %s739_s12, %s465_s26  ;;  %s470_s18 = sshll.u32 %s592_s17, 4  ;;  %s471_s18 = int_to_ptr.vmem [resolvable:$false] %s470_s18 }
  0x49   : > { %s472_s28 = scalar_lea.vmem %s471_s18, 32  ;;  %p473_p0 = scmp.lt.s32.totalorder %s739_s12, %s471_s18 }
  0x4a   : > { %p468_p5 = pnand %p466_p11, %p452_p3  ;;  %p474_p7 = scmp.lt.s32.totalorder %s472_s28, %s465_s26 }
  0x4c   : > { %p469_p4 = pneg %p468_p5  ;;  %p475_p10 = por %p474_p7, %p473_p0 }
  0x4e   : > { %p476_p13 = pnand %p475_p10, %p469_p4 }
  0x50   : > { %479 = shalt.err (!%p476_p13)
}
  0x51   : > { %346 = dma.hbm_to_vmem [thread:$0]  (!%p724_p12), %s744_s16, 16, %s739_s12, %s145_s19  }
  0x52   : > { %175 = sbr.rel (%p735_p2) target bundleno = 133 (0x85), region = 28  ;;  %s177_s23 = sand.u32 (!%p735_p2), 1, %s572_s6  }
  0x53   : > { %s178_s29 = scalar_lea.sflag (!%p735_p2), [#allocation6], %s177_s23  ;;  %s180_s5 = scalar_lea.vmem (!%p735_p2), [#allocation5], %s177_s23 }
  0x54   : > { %p854_p8 = scmp.ne.s32.totalorder (!%p735_p2), %s849_s20, 0 }
  0x59   : > { %547 = dma.done.wait (%p854_p8), %s178_s29, 16  }
  0x5a   : > { %549 = vsyncadd (%p854_p8), %s178_s29, 4294967280  ;;  %s202_s11 = sand.u32 1, %s560_s1   ;;  %vm217_vm0 = vcmask 253952   ;;  %s207_s27 = sld [smem:[#allocation4 + %s580_s8]]  ;;  %v593_v0 = vmov 0.0  }
  0x5b   : > { %s203_s15 = scalar_lea.vmem [#allocation8], %s202_s11  ;;  %p331_p4 = scmp.ge.s32.totalorder %s580_s8, 2 }
  0x5c   : > { %218 = vst.msk [vmem:[%s203_s15] sm:$0x1] %vm217_vm0, %v593_v0  ;;  %v224_v1 = vld [vmem:[%s180_s5] sm:$0x1] (!%p331_p4) }
  0x5d   : > { %223 = sbr.rel (%p331_p4) target bundleno = 108 (0x6c), region = 40 }
  0x60   : > { %p208_p0 = scmp.lt.s32.totalorder %s207_s27, 7 }
  0x62   : > { %s873_s27 = smov (!%p208_p0, %s207_s27), 7 }
  0x63   : > { %s210_s16 = scalar_lea.vmem %s843_s3, %s873_s27  ;;  %v227_v4 = vld [vmem:[%s203_s15] sm:$0x1] (!%p331_p4) }
  0x64   : > { %v225_v2 = vld [vmem:[%s210_s16] sm:$0x1] }
  0x65   : > { %v226_v3 = vsub.f32 %v224_v1, %v225_v2 }
  0x67   : > { %v228_v5 = vmul.f32 %v226_v3, %v226_v3 }
  0x69   : > { %v229_v6 = vadd.f32 %v228_v5, %v227_v4 }
  0x6b   : > { %231 = vst.msk [vmem:[%s203_s15] sm:$0x1] %vm217_vm0, %v229_v6 }
  0x6c PF: > { %s332_s20 = sshll.u32 %s580_s8, 4  ;;  %s245_s18 = sshll.u32 %s203_s15, 4  ;;  %s246_s18 = int_to_ptr.vmem [resolvable:$true] %s245_s18 }
  0x6d   : > { %s790_s17 = scalar_lea.hbm %s844_s4, %s332_s20  ;;  %s233_s28 = scalar_lea.sflag [#allocation7], %s202_s11 }
  0x6e   : > { %s480_s23 = scalar_lea.vmem %s246_s18, 16  ;;  %p855_p12 = scmp.ne.s32.totalorder %s850_s22, 0 }
  0x6f   : > { %p481_p9 = scmp.ne.s32.totalorder %s246_s18, %s480_s23  ;;  %s594_s29 = smov [#allocation8]  }
  0x70   : > { %s484_s5 = sshll.u32 %s594_s29, 4  ;;  %s485_s5 = int_to_ptr.vmem [resolvable:$false] %s484_s5 }
  0x71   : > { %p482_p2 = pnand %p481_p9, %p855_p12  ;;  %s486_s27 = scalar_lea.vmem %s485_s5, 32 }
  0x72   : > { %p487_p6 = scmp.lt.s32.totalorder %s246_s18, %s485_s5  ;;  %p488_p1 = scmp.lt.s32.totalorder %s486_s27, %s480_s23 }
  0x73   : > { %p483_p3 = pneg %p482_p2 }
  0x74   : > { %p489_p11 = por %p488_p1, %p487_p6 }
  0x76   : > { %p490_p5 = pnand %p489_p11, %p483_p3 }
  0x78   : > { %493 = shalt.err (!%p490_p5)
}
  0x79   : > { %s494_s8 = scalar_lea.hbm %s790_s17, 16  ;;  %s498_s12 = scalar_lea.hbm %s844_s4, 32 }
  0x7a   : > { %p495_p7 = scmp.ne.s32.totalorder %s790_s17, %s494_s8  ;;  %p499_p8 = scmp.lt.u32.totalorder %s790_s17, %s844_s4 }
  0x7b   : > { %p500_p0 = scmp.lt.u32.totalorder %s498_s12, %s494_s8  ;;  %p502_p9 = scmp.lt.u32.totalorder %s494_s8, %s790_s17 }
  0x7c   : > { %p496_p10 = pnand %p495_p7, %p855_p12 }
  0x7d   : > { %p501_p4 = por %p500_p0, %p499_p8 }
  0x7e   : > { %p497_p13 = pneg %p496_p10 }
  0x7f   : > { %p503_p2 = por %p502_p9, %p501_p4 }
  0x81   : > { %p504_p3 = pnand %p503_p2, %p497_p13 }
  0x83   : > { %507 = shalt.err (!%p504_p3)
}
  0x84   : > { %339 = dma.vmem_to_hbm [thread:$0]  (%p855_p12), %s246_s18, 16, %s790_s17, %s233_s28  }
  0x85 PF: > { %s257_s20 = sand.u32 1, %s556_s0   ;;  %p856_p6 = scmp.ne.s32.totalorder %s851_s24, 0 }
  0x86   : > { %p857_p1 = scmp.ge.s32.totalorder %s588_s10, 2  ;;  %s258_s19 = scalar_lea.sflag [#allocation7], %s257_s20 }
  0x88   : > { %p348_p11 = pnand %p857_p1, %p856_p6 }
  0x8a   : > { %551 = dma.done.wait (!%p348_p11), %s258_s19, 16  }
  0x8b   : > { %553 = vsyncadd (!%p348_p11), %s258_s19, 4294967280  ;;  %s28_s10 = sadd.s32 1, %s588_s10   ;;  %s858_s0 = smov %s560_s1 }
  0x8c   : > { %p25_p5 = scmp.ge.s32.totalorder %s28_s10, 4   ;;  %s859_s1 = smov %s564_s30 }
  0x8d   : > { %s860_s30 = smov %s704_s21  ;;  %s861_s5 = smov %s572_s6 }
  0x8e   : > { %s862_s6 = smov %s576_s7  ;;  %s863_s7 = smov %s719_s25 }
  0x8f   : > { %s864_s8 = smov %s584_s9  ;;  %s865_s9 = smov %s867_s13 }
  0x90   :  { %27 = sbr.rel (!%p25_p5) target bundleno = 30 (0x1e), region = 84 }
  0x97   :  { %262 = vsyncpa [#allocation6], 1 }
  0x98   :  { %264 = vsyncpa [#allocation6 + $0x1], 1 }
  0x99   :  { %265 = vsyncpa [#allocation7], 1 }
  0x9a   :  { %267 = vsyncpa [#allocation7 + $0x1], 1 }

</bundles_post_ra>
